<compile_context>
chip_gen: v5e
topology: v5e:2x2
jax: 0.10.0
libtpu: 0.0.40
codegen_flags: <defaults>
</compile_context>

<pallas_src>
import functools

import jax
import jax.numpy as jnp
from jax.experimental import pallas as pl
from jax.experimental.pallas import tpu as pltpu

_LANE = 128
_SUB = 8
_TK = 256          # band (K) tile — matches the 256-wide MXU on v6e/v7x
_TN = 256          # output-time tile


# ----------------------------- Pallas kernel ------------------------------- #

def _make_kernel(tm, n_band):
    def kernel(diff_ref, w_hi_ref, w_lo_ref, out_ref):
        # grid = (row tile i [parallel], output time tile j [parallel])
        j = pl.program_id(1)

        # Filtered tile accumulator kept as an f32 value (no cross-step carry).
        y = jnp.zeros((tm, _TN), jnp.float32)

        # Static, small band loop (unrolled).  The diff row block holds the
        # whole (left-padded) time axis, so each band is a 256-wide window.
        for b in range(n_band):
            start = pl.multiple_of((j + b) * _TK, _TK)
            x = diff_ref[:, pl.ds(start, _TK)]                    # (tm, TK) bf16
            m = j * n_band + b
            y = y + jnp.dot(x, w_hi_ref[m], preferred_element_type=jnp.float32)
            y = y + jnp.dot(x, w_lo_ref[m], preferred_element_type=jnp.float32)

        # Square and fold down to a lane-dense (8, 128) partial for this (i, j).
        y2 = y * y                                                # (tm, TN) f32
        acc = y2[:, 0:_LANE]
        for chunk in range(1, _TN // _LANE):
            acc = acc + y2[:, chunk * _LANE:(chunk + 1) * _LANE]  # (tm, 128)
        partial = acc.reshape(tm // _SUB, _SUB, _LANE).sum(axis=0)  # (8, 128)
        out_ref[...] = partial[None, None]

    return kernel


# ------------------------------ glue / setup ------------------------------- #

def _round_up(v, m):
    return (v + m - 1) // m * m


def _fir_response(time_constant, length, filter_order):
    """Deterministic FIR init, matching FIR.__init__ + SpikeTime.__init__."""
    fir0 = jnp.exp(-jnp.arange(length, dtype=jnp.float32) / float(time_constant))
    fir = fir0
    for _ in range(filter_order - 1):
        fir = jnp.convolve(fir, fir0, mode="full")[:length]
    return fir


def _banded_filter_planes(fir, t_orig, t_pad, length):
    """Banded hi/lo-bf16 storage of the Toeplitz filter W[s, t] = fir[t - s].

    Returns (w_hi, w_lo) of shape (n_t * n_band, TK, TN) such that for output
    time tile j and band b (flat index m = j*n_band + b):
      w[m][r, c] = W[j*TN - lpad + b*TK + r, j*TN + c]
    with lpad = (n_band - 1)*TK, zero where t - s is outside [0, length) or the
    output column t >= t_orig (padded time steps).
    """
    n_t = t_pad // _TN
    if length > 1:
        n_band = 1 + (length - 1 + _TK - 1) // _TK
    else:
        n_band = 1
    lpad = (n_band - 1) * _TK

    r = jnp.arange(_TK)[:, None]                           # (TK, 1)
    c = jnp.arange(_TN)[None, :]                           # (1, TN)
    b = jnp.arange(n_band)[:, None, None]                  # (nb, 1, 1)
    k = lpad - b * _TK + (c - r)[None]                     # (nb, TK, TN)
    base = jnp.where((k >= 0) & (k < length),
                     jnp.take(fir, jnp.clip(k, 0, length - 1)), 0.0)

    j = jnp.arange(n_t)[:, None, None, None]               # (n_t, 1, 1, 1)
    col_ok = (j * _TN + c[None, None]) < t_orig            # (n_t, 1, 1, TN)
    w = jnp.where(col_ok, base[None], 0.0)                 # (n_t, nb, TK, TN) f32

    w_hi = w.astype(jnp.bfloat16)
    w_lo = (w - w_hi.astype(jnp.float32)).astype(jnp.bfloat16)
    shape = (n_t * n_band, _TK, _TN)
    return w_hi.reshape(shape), w_lo.reshape(shape), n_band, lpad


@functools.partial(
    jax.jit, static_argnames=("time_constant", "length", "filter_order", "reduction")
)
def spike_time_loss(x, d, *, time_constant=5, length=100, filter_order=1,
                    reduction="sum"):
    assert x.shape == d.shape, "input and desired spike trains must match in shape"

    t_orig = x.shape[-1]
    m_orig = 1
    for s in x.shape[:-1]:
        m_orig *= s

    fir = _fir_response(time_constant, length, filter_order)
    t_pad = _round_up(max(t_orig, _TN), _TN)
    w_hi, w_lo, n_band, lpad = _banded_filter_planes(fir, t_orig, t_pad, length)
    n_t = t_pad // _TN
    t_total = lpad + t_pad

    # Row tiling: multiples of 16 for bf16 sublane packing; cap so the
    # row-resident diff block (double-buffered bf16) stays well inside VMEM.
    m_r = _round_up(max(m_orig, 16), 16)
    tm_cap = max(16, ((8 * 1024 * 1024) // (4 * t_total)) // 16 * 16)
    tm = min(512, m_r, tm_cap)
    m_pad = _round_up(m_r, tm)
    n_row = m_pad // tm

    # Fused prologue: subtract, cast, pad in one shot.  The bf16 carrier is
    # exact for binary spike trains (differences in {-1, 0, +1}).
    # TODO(synk): graded (non-binary) spike inputs would be rounded to bf16 here.
    diff = (x - d).reshape(m_orig, t_orig).astype(jnp.bfloat16)
    diff_p = jnp.pad(diff, ((0, m_pad - m_orig), (lpad, t_pad - t_orig)))

    diff_spec = pl.BlockSpec((tm, t_total), lambda i, j: (i, 0))
    w_spec = pl.BlockSpec((n_t * n_band, _TK, _TN), lambda i, j: (0, 0, 0))
    out_spec = pl.BlockSpec((1, 1, _SUB, _LANE), lambda i, j: (i, j, 0, 0))

    flops = 4 * m_pad * t_pad * n_band * _TK           # 2 bf16 planes, 2*TM*TK*TN each
    bytes_accessed = (m_pad * t_total * 2
                      + 2 * n_t * n_band * _TK * _TN * 2
                      + n_row * n_t * _SUB * _LANE * 4)

    partials = pl.pallas_call(
        _make_kernel(tm, n_band),
        out_shape=jax.ShapeDtypeStruct((n_row, n_t, _SUB, _LANE), jnp.float32),
        grid_spec=pltpu.PrefetchScalarGridSpec(
            num_scalar_prefetch=0,
            grid=(n_row, n_t),
            in_specs=[diff_spec, w_spec, w_spec],
            out_specs=out_spec,
        ),
        compiler_params=pltpu.CompilerParams(
            dimension_semantics=("parallel", "parallel"),
            vmem_limit_bytes=48 * 1024 * 1024),
        cost_estimate=pl.CostEstimate(
            flops=flops, transcendentals=0, bytes_accessed=bytes_accessed),
    )(diff_p, w_hi, w_lo)

    loss = jnp.sum(partials)
    if reduction == "mean":
        loss = loss / jnp.float32(m_orig * t_orig)
    return loss


# ------------------------------ reference ---------------------------------- #

def _toeplitz_filter_matrix(fir, t):
    length = fir.shape[0]
    idx = jnp.arange(t)
    k = idx[None, :] - idx[:, None]                      # k[s, t] = t - s
    valid = (k >= 0) & (k < length)
    vals = jnp.take(fir, jnp.clip(k, 0, length - 1))
    return jnp.where(valid, vals, 0.0).astype(jnp.float32)


def _reference_loss(x, d, time_constant=5, length=100, filter_order=1,
                    reduction="sum"):
    """Pure-JAX f32 reference mirroring torch: FIR filter both, then MSE."""
    t = x.shape[-1]
    fir = _fir_response(time_constant, length, filter_order)
    w = _toeplitz_filter_matrix(fir, t)
    yx = x.reshape(-1, t).astype(jnp.float32) @ w
    yd = d.reshape(-1, t).astype(jnp.float32) @ w
    diff = (yx - yd).ravel()
    loss = jnp.sum(diff * diff)
    if reduction == "mean":
        loss = loss / jnp.float32(diff.size)
    return loss


# --------------------------------- main ------------------------------------ #

if __name__ == "__main__":
    key = jax.random.PRNGKey(0)
    kx, kd, kx2, kd2 = jax.random.split(key, 4)

    # Case 1: batch=2, neurons=4, time=128 (single time tile, sum reduction).
    N, C, T = 2, 4, 128
    x = (jax.random.uniform(kx, (N, C, T)) < 0.1).astype(jnp.float32)
    d = (jax.random.uniform(kd, (N, C, T)) < 0.1).astype(jnp.float32)
    loss = jax.block_until_ready(
        spike_time_loss(x, d, time_constant=5, length=100, filter_order=1,
                        reduction="sum"))
    ref = _reference_loss(x, d)
    assert jnp.allclose(loss, ref, rtol=1e-4, atol=1e-4), (loss, ref)

    # Case 2: non-aligned shapes exercising row/time padding, two time tiles,
    # the cross-tile FIR band and the 'mean' reduction.
    N2, C2, T2 = 3, 5, 300
    x2 = (jax.random.uniform(kx2, (N2, C2, T2)) < 0.1).astype(jnp.float32)
    d2 = (jax.random.uniform(kd2, (N2, C2, T2)) < 0.1).astype(jnp.float32)
    loss2 = jax.block_until_ready(
        spike_time_loss(x2, d2, time_constant=5, length=100, filter_order=1,
                        reduction="mean"))
    ref2 = _reference_loss(x2, d2, reduction="mean")
    assert jnp.allclose(loss2, ref2, rtol=1e-4, atol=1e-4), (loss2, ref2)

    print("KERNEL_OK")
</pallas_src>

<mosaic_0001>
module attributes {stable_mosaic.version = 11 : i64} {
  func.func @kernel(%arg0: i32, %arg1: i32, %arg2: memref<16x512xbf16, #tpu.memory_space<vmem>>, %arg3: memref<2x256x256xbf16, #tpu.memory_space<vmem>>, %arg4: memref<2x256x256xbf16, #tpu.memory_space<vmem>>, %arg5: memref<1x1x8x128xf32, #tpu.memory_space<vmem>>) attributes {dimension_semantics = [#tpu.dimension_semantics<parallel>, #tpu.dimension_semantics<parallel>], iteration_bounds = array<i64: 1, 1>, scalar_prefetch = 0 : i64, scratch_operands = 0 : i64, tpu.core_type = #tpu.core_type<tc>, window_params = [{transform_indices = @transform_0, window_bounds = array<i64: 16, 512>}, {pipeline_mode = #tpu.pipeline_mode<synchronous>, transform_indices = @transform_1, window_bounds = array<i64: 2, 256, 256>}, {pipeline_mode = #tpu.pipeline_mode<synchronous>, transform_indices = @transform_2, window_bounds = array<i64: 2, 256, 256>}, {transform_indices = @transform_3, window_bounds = array<i64: 1, 1, 8, 128>}]} {
    %cst = arith.constant 0.000000e+00 : f32
    %0 = vector.broadcast %cst : f32 to vector<16x256xf32>
    %c0_i32 = arith.constant 0 : i32
    %1 = arith.addi %arg1, %c0_i32 : i32
    %c256_i32 = arith.constant 256 : i32
    %2 = arith.muli %1, %c256_i32 : i32
    %3 = tpu.assume_multiple %2, 256 : i32
    %c0 = arith.constant 0 : index
    %4 = arith.index_cast %3 : i32 to index
    %5 = vector.load %arg2[%c0, %4] : memref<16x512xbf16, #tpu.memory_space<vmem>>, vector<16x256xbf16>
    %c2_i32 = arith.constant 2 : i32
    %6 = arith.muli %arg1, %c2_i32 : i32
    %c0_i32_0 = arith.constant 0 : i32
    %7 = arith.addi %6, %c0_i32_0 : i32
    %8 = arith.index_cast %7 : i32 to index
    %c0_1 = arith.constant 0 : index
    %c0_2 = arith.constant 0 : index
    %9 = vector.load %arg3[%8, %c0_1, %c0_2] : memref<2x256x256xbf16, #tpu.memory_space<vmem>>, vector<1x256x256xbf16>
    %10 = vector.shape_cast %9 : vector<1x256x256xbf16> to vector<256x256xbf16>
    %cst_3 = arith.constant dense<0.000000e+00> : vector<16x256xf32>
    %11 = tpu.matmul %5, %10, %cst_3 {dimension_numbers = #tpu.dot_dimension_numbers<[1], [0], [0], [1], [0, 0, 1, 1], [], []>} : vector<16x256xbf16>, vector<256x256xbf16>, vector<16x256xf32> -> vector<16x256xf32>
    %12 = arith.addf %0, %11 : vector<16x256xf32>
    %13 = arith.index_cast %7 : i32 to index
    %c0_4 = arith.constant 0 : index
    %c0_5 = arith.constant 0 : index
    %14 = vector.load %arg4[%13, %c0_4, %c0_5] : memref<2x256x256xbf16, #tpu.memory_space<vmem>>, vector<1x256x256xbf16>
    %15 = vector.shape_cast %14 : vector<1x256x256xbf16> to vector<256x256xbf16>
    %cst_6 = arith.constant dense<0.000000e+00> : vector<16x256xf32>
    %16 = tpu.matmul %5, %15, %cst_6 {dimension_numbers = #tpu.dot_dimension_numbers<[1], [0], [0], [1], [0, 0, 1, 1], [], []>} : vector<16x256xbf16>, vector<256x256xbf16>, vector<16x256xf32> -> vector<16x256xf32>
    %17 = arith.addf %12, %16 : vector<16x256xf32>
    %c1_i32 = arith.constant 1 : i32
    %18 = arith.addi %arg1, %c1_i32 : i32
    %c256_i32_7 = arith.constant 256 : i32
    %19 = arith.muli %18, %c256_i32_7 : i32
    %20 = tpu.assume_multiple %19, 256 : i32
    %c0_8 = arith.constant 0 : index
    %21 = arith.index_cast %20 : i32 to index
    %22 = vector.load %arg2[%c0_8, %21] : memref<16x512xbf16, #tpu.memory_space<vmem>>, vector<16x256xbf16>
    %c2_i32_9 = arith.constant 2 : i32
    %23 = arith.muli %arg1, %c2_i32_9 : i32
    %c1_i32_10 = arith.constant 1 : i32
    %24 = arith.addi %23, %c1_i32_10 : i32
    %25 = arith.index_cast %24 : i32 to index
    %c0_11 = arith.constant 0 : index
    %c0_12 = arith.constant 0 : index
    %26 = vector.load %arg3[%25, %c0_11, %c0_12] : memref<2x256x256xbf16, #tpu.memory_space<vmem>>, vector<1x256x256xbf16>
    %27 = vector.shape_cast %26 : vector<1x256x256xbf16> to vector<256x256xbf16>
    %cst_13 = arith.constant dense<0.000000e+00> : vector<16x256xf32>
    %28 = tpu.matmul %22, %27, %cst_13 {dimension_numbers = #tpu.dot_dimension_numbers<[1], [0], [0], [1], [0, 0, 1, 1], [], []>} : vector<16x256xbf16>, vector<256x256xbf16>, vector<16x256xf32> -> vector<16x256xf32>
    %29 = arith.addf %17, %28 : vector<16x256xf32>
    %30 = arith.index_cast %24 : i32 to index
    %c0_14 = arith.constant 0 : index
    %c0_15 = arith.constant 0 : index
    %31 = vector.load %arg4[%30, %c0_14, %c0_15] : memref<2x256x256xbf16, #tpu.memory_space<vmem>>, vector<1x256x256xbf16>
    %32 = vector.shape_cast %31 : vector<1x256x256xbf16> to vector<256x256xbf16>
    %cst_16 = arith.constant dense<0.000000e+00> : vector<16x256xf32>
    %33 = tpu.matmul %22, %32, %cst_16 {dimension_numbers = #tpu.dot_dimension_numbers<[1], [0], [0], [1], [0, 0, 1, 1], [], []>} : vector<16x256xbf16>, vector<256x256xbf16>, vector<16x256xf32> -> vector<16x256xf32>
    %34 = arith.addf %29, %33 : vector<16x256xf32>
    %35 = arith.mulf %34, %34 : vector<16x256xf32>
    %36 = vector.extract_strided_slice %35 {offsets = [0, 0], sizes = [16, 128], strides = [1, 1]} : vector<16x256xf32> to vector<16x128xf32>
    %37 = vector.extract_strided_slice %35 {offsets = [0, 128], sizes = [16, 128], strides = [1, 1]} : vector<16x256xf32> to vector<16x128xf32>
    %38 = arith.addf %36, %37 : vector<16x128xf32>
    %39 = vector.shape_cast %38 : vector<16x128xf32> to vector<2x8x128xf32>
    %cst_17 = arith.constant dense<0.000000e+00> : vector<8x128xf32>
    %40 = vector.multi_reduction <add>, %39, %cst_17 [0] : vector<2x8x128xf32> to vector<8x128xf32>
    %41 = vector.shape_cast %40 : vector<8x128xf32> to vector<1x1x8x128xf32>
    %c0_18 = arith.constant 0 : index
    %c0_19 = arith.constant 0 : index
    %c0_20 = arith.constant 0 : index
    %c0_21 = arith.constant 0 : index
    %42 = vector.load %arg5[%c0_18, %c0_19, %c0_20, %c0_21] : memref<1x1x8x128xf32, #tpu.memory_space<vmem>>, vector<1x1x8x128xf32>
    tpu.vector_store %arg5[%c0_18, %c0_19, %c0_20, %c0_21], %41 {strides = array<i32>} : memref<1x1x8x128xf32, #tpu.memory_space<vmem>>, vector<1x1x8x128xf32>,
    return
  }
  func.func @transform_0(%arg0: i32, %arg1: i32) -> (i32, i32) {
    %c0_i32 = arith.constant 0 : i32
    %c0_i32_0 = arith.constant 0 : i32
    return %arg0, %c0_i32 : i32, i32
  }
  func.func @transform_1(%arg0: i32, %arg1: i32) -> (i32, i32, i32) {
    %c0_i32 = arith.constant 0 : i32
    %c0_i32_0 = arith.constant 0 : i32
    %c0_i32_1 = arith.constant 0 : i32
    %c0_i32_2 = arith.constant 0 : i32
    return %c0_i32, %c0_i32_0, %c0_i32_1 : i32, i32, i32
  }
  func.func @transform_2(%arg0: i32, %arg1: i32) -> (i32, i32, i32) {
    %c0_i32 = arith.constant 0 : i32
    %c0_i32_0 = arith.constant 0 : i32
    %c0_i32_1 = arith.constant 0 : i32
    %c0_i32_2 = arith.constant 0 : i32
    return %c0_i32, %c0_i32_0, %c0_i32_1 : i32, i32, i32
  }
  func.func @transform_3(%arg0: i32, %arg1: i32) -> (i32, i32, i32, i32) {
    %c0_i32 = arith.constant 0 : i32
    %c0_i32_0 = arith.constant 0 : i32
    %c0_i32_1 = arith.constant 0 : i32
    return %arg0, %arg1, %c0_i32, %c0_i32_0 : i32, i32, i32, i32
  }
}

</mosaic_0001>

<bundles_post_ra>
// kernel: spike_time_loss.1
= control target key start
LH: loop header
LB: loop body
LE: loop exit
PB: predicated region body
PF: predicated region fallthrough
CT: control target
= control target key end

     0   :  { %s2644_s2 = inlined_call_operand.vmem [shape: bf16[2,256,256], index: 2, kind: input, shape index: {}]   ;;  %s2645_s1 = inlined_call_operand.vmem [shape: bf16[2,256,256], index: 1, kind: input, shape index: {}]   ;;  %s2646_s0 = inlined_call_operand.vmem [shape: bf16[16,512], index: 0, kind: input, shape index: {}]   ;;  %s2647_s3 = inlined_call_operand.vmem [shape: f32[1,1,8,128], index: 3, kind: output, shape index: {}]  }
   0x1   :  { %v1145_v0 = vld [vmem:[%s2644_s2 + $0x70] sm:$0xf]  ;;  %v1722_v1 = vld [vmem:[%s2644_s2 + $0x74] sm:$0xf0]  ;;  %v1721_v5 = vld [vmem:[%s2644_s2 + $0x74] sm:$0xf] }
   0x2   :  { %v1209_v2 = vld [vmem:[%s2644_s2 + $0xf0] sm:$0xf]  ;;  %v1146_v3 = vor.u32 %v1722_v1, %v1145_v0  ;;  %v1738_v4 = vld [vmem:[%s2644_s2 + $0xf4] sm:$0xf0]  ;;  %v1147_v6 = vld [vmem:[%s2644_s2 + $0x78] sm:$0xf0] }
   0x3   :  { %v1210_v7 = vor.u32 %v1738_v4, %v1209_v2  ;;  %v1150_v8 = vor.u32 %v1721_v5, %v1147_v6  ;;  %v1737_v9 = vld [vmem:[%s2644_s2 + $0xf4] sm:$0xf]  ;;  %v1211_v10 = vld [vmem:[%s2644_s2 + $0xf8] sm:$0xf0]  ;;  %v1137_v11 = vld [vmem:[%s2644_s2 + $0x60] sm:$0xf] }
   0x4   :  { %261 = vmatpush.bf16.msra.mxu0 %v1146_v3  ;;  %v1214_v12 = vor.u32 %v1737_v9, %v1211_v10  ;;  %v1720_v13 = vld [vmem:[%s2644_s2 + $0x64] sm:$0xf0]  ;;  %v1201_v14 = vld [vmem:[%s2644_s2 + $0xe0] sm:$0xf]  ;;  %v1719_v18 = vld [vmem:[%s2644_s2 + $0x64] sm:$0xf] }
   0x5   :  { %v1736_v15 = vld [vmem:[%s2644_s2 + $0xe4] sm:$0xf0]  ;;  %275 = vmatpush.bf16.msra.mxu1 %v1210_v7  ;;  %289 = vmatpush.bf16.msra.mxu2 %v1150_v8  ;;  %v1138_v16 = vor.u32 %v1720_v13, %v1137_v11  ;;  %v1139_v19 = vld [vmem:[%s2644_s2 + $0x68] sm:$0xf0]  ;;  %v1735_v20 = vld [vmem:[%s2644_s2 + $0xe4] sm:$0xf] }
   0x6   :  { %v1202_v17 = vor.u32 %v1736_v15, %v1201_v14  ;;  %303 = vmatpush.bf16.msra.mxu3 %v1214_v12  ;;  %v1142_v21 = vor.u32 %v1719_v18, %v1139_v19  ;;  %v1203_v22 = vld [vmem:[%s2644_s2 + $0xe8] sm:$0xf0]  ;;  %v1129_v23 = vld [vmem:[%s2644_s2 + $0x50] sm:$0xf]  ;;  %v1718_v24 = vld [vmem:[%s2644_s2 + $0x54] sm:$0xf0] }
   0x7   :  { %v1206_v25 = vor.u32 %v1735_v20, %v1203_v22  ;;  %v1193_v26 = vld [vmem:[%s2644_s2 + $0xd0] sm:$0xf]  ;;  %v1734_v27 = vld [vmem:[%s2644_s2 + $0xd4] sm:$0xf0]  ;;  %v1717_v28 = vld [vmem:[%s2644_s2 + $0x54] sm:$0xf]  ;;  %v1130_v29 = vor.u32 %v1718_v24, %v1129_v23 }
   0x8   :  { %262 = vmatpush.bf16.msra.mxu0 %v1138_v16  ;;  %v1131_v30 = vld [vmem:[%s2644_s2 + $0x58] sm:$0xf0]  ;;  %v1733_v31 = vld [vmem:[%s2644_s2 + $0xd4] sm:$0xf]  ;;  %v1194_v33 = vor.u32 %v1734_v27, %v1193_v26  ;;  %v1121_v35 = vld [vmem:[%s2644_s2 + $0x40] sm:$0xf] }
   0x9   :  { %v1195_v32 = vld [vmem:[%s2644_s2 + $0xd8] sm:$0xf0]  ;;  %276 = vmatpush.bf16.msra.mxu1 %v1202_v17  ;;  %290 = vmatpush.bf16.msra.mxu2 %v1142_v21  ;;  %v1134_v34 = vor.u32 %v1717_v28, %v1131_v30  ;;  %v1716_v36 = vld [vmem:[%s2644_s2 + $0x44] sm:$0xf0]  ;;  %v1185_v37 = vld [vmem:[%s2644_s2 + $0xc0] sm:$0xf] }
   0xa   :  { %304 = vmatpush.bf16.msra.mxu3 %v1206_v25  ;;  %v1198_v38 = vor.u32 %v1733_v31, %v1195_v32  ;;  %v1732_v39 = vld [vmem:[%s2644_s2 + $0xc4] sm:$0xf0]  ;;  %v1715_v40 = vld [vmem:[%s2644_s2 + $0x44] sm:$0xf]  ;;  %v1123_v41 = vld [vmem:[%s2644_s2 + $0x48] sm:$0xf0]  ;;  %v1122_v44 = vor.u32 %v1716_v36, %v1121_v35 }
   0xb   :  { %v1731_v42 = vld [vmem:[%s2644_s2 + $0xc4] sm:$0xf]  ;;  %v1187_v43 = vld [vmem:[%s2644_s2 + $0xc8] sm:$0xf0]  ;;  %v1186_v45 = vor.u32 %v1732_v39, %v1185_v37  ;;  %v1126_v46 = vor.u32 %v1715_v40, %v1123_v41  ;;  %v1113_v47 = vld [vmem:[%s2644_s2 + $0x30] sm:$0xf] }
   0xc   :  { %263 = vmatpush.bf16.msra.mxu0 %v1130_v29  ;;  %v1714_v48 = vld [vmem:[%s2644_s2 + $0x34] sm:$0xf0]  ;;  %v1177_v49 = vld [vmem:[%s2644_s2 + $0xb0] sm:$0xf]  ;;  %v1190_v50 = vor.u32 %v1731_v42, %v1187_v43  ;;  %v1713_v52 = vld [vmem:[%s2644_s2 + $0x34] sm:$0xf] }
   0xd   :  { %277 = vmatpush.bf16.msra.mxu1 %v1194_v33  ;;  %291 = vmatpush.bf16.msra.mxu2 %v1134_v34  ;;  %v1730_v51 = vld [vmem:[%s2644_s2 + $0xb4] sm:$0xf0]  ;;  %v1115_v53 = vld [vmem:[%s2644_s2 + $0x38] sm:$0xf0]  ;;  %v1729_v54 = vld [vmem:[%s2644_s2 + $0xb4] sm:$0xf]  ;;  %v1114_v56 = vor.u32 %v1714_v48, %v1113_v47 }
   0xe   :  { %305 = vmatpush.bf16.msra.mxu3 %v1198_v38  ;;  %v1179_v55 = vld [vmem:[%s2644_s2 + $0xb8] sm:$0xf0]  ;;  %v1178_v57 = vor.u32 %v1730_v51, %v1177_v49  ;;  %v1118_v58 = vor.u32 %v1713_v52, %v1115_v53  ;;  %v1105_v59 = vld [vmem:[%s2644_s2 + $0x20] sm:$0xf]  ;;  %v1712_v60 = vld [vmem:[%s2644_s2 + $0x24] sm:$0xf0] }
   0xf   :  { %v1169_v61 = vld [vmem:[%s2644_s2 + $0xa0] sm:$0xf]  ;;  %v1182_v62 = vor.u32 %v1729_v54, %v1179_v55  ;;  %v1728_v63 = vld [vmem:[%s2644_s2 + $0xa4] sm:$0xf0]  ;;  %v1711_v0 = vld [vmem:[%s2644_s2 + $0x24] sm:$0xf]  ;;  %v1106_v4 = vor.u32 %v1712_v60, %v1105_v59 }
  0x10   :  { %264 = vmatpush.bf16.msra.mxu0 %v1122_v44  ;;  %v1107_v1 = vld [vmem:[%s2644_s2 + $0x28] sm:$0xf0]  ;;  %v1727_v2 = vld [vmem:[%s2644_s2 + $0xa4] sm:$0xf]  ;;  %v1170_v5 = vor.u32 %v1728_v63, %v1169_v61  ;;  %v1097_v7 = vld [vmem:[%s2644_s2 + $0x10] sm:$0xf] }
  0x11   :  { %278 = vmatpush.bf16.msra.mxu1 %v1186_v45  ;;  %292 = vmatpush.bf16.msra.mxu2 %v1126_v46  ;;  %v1171_v3 = vld [vmem:[%s2644_s2 + $0xa8] sm:$0xf0]  ;;  %v1110_v6 = vor.u32 %v1711_v0, %v1107_v1  ;;  %v1710_v8 = vld [vmem:[%s2644_s2 + $0x14] sm:$0xf0]  ;;  %v1161_v9 = vld [vmem:[%s2644_s2 + $0x90] sm:$0xf] }
  0x12   :  { %306 = vmatpush.bf16.msra.mxu3 %v1190_v50  ;;  %v1174_v10 = vor.u32 %v1727_v2, %v1171_v3  ;;  %v1726_v11 = vld [vmem:[%s2644_s2 + $0x94] sm:$0xf0]  ;;  %v1709_v12 = vld [vmem:[%s2644_s2 + $0x14] sm:$0xf]  ;;  %v1099_v13 = vld [vmem:[%s2644_s2 + $0x18] sm:$0xf0]  ;;  %v1098_v16 = vor.u32 %v1710_v8, %v1097_v7 }
  0x13   :  { %v1725_v14 = vld [vmem:[%s2644_s2 + $0x94] sm:$0xf]  ;;  %v1163_v15 = vld [vmem:[%s2644_s2 + $0x98] sm:$0xf0]  ;;  %v1089_v17 = vld [vmem:[%s2644_s2] sm:$0xf]  ;;  %v1162_v19 = vor.u32 %v1726_v11, %v1161_v9  ;;  %v1102_v20 = vor.u32 %v1709_v12, %v1099_v13 }
  0x14   :  { %265 = vmatpush.bf16.msra.mxu0 %v1114_v56  ;;  %v1708_v18 = vld [vmem:[%s2644_s2 + $0x4] sm:$0xf0]  ;;  %v1153_v21 = vld [vmem:[%s2644_s2 + $0x80] sm:$0xf]  ;;  %v1707_v23 = vld [vmem:[%s2644_s2 + $0x4] sm:$0xf]  ;;  %v1166_v24 = vor.u32 %v1725_v14, %v1163_v15 }
  0x15   :  { %279 = vmatpush.bf16.msra.mxu1 %v1178_v57  ;;  %293 = vmatpush.bf16.msra.mxu2 %v1118_v58  ;;  %v1724_v22 = vld [vmem:[%s2644_s2 + $0x84] sm:$0xf0]  ;;  %v1091_v25 = vld [vmem:[%s2644_s2 + $0x8] sm:$0xf0]  ;;  %v1723_v26 = vld [vmem:[%s2644_s2 + $0x84] sm:$0xf]  ;;  %v1090_v31 = vor.u32 %v1708_v18, %v1089_v17 }
  0x16   :  { %307 = vmatpush.bf16.msra.mxu3 %v1182_v62  ;;  %v1155_v27 = vld [vmem:[%s2644_s2 + $0x88] sm:$0xf0]  ;;  %v1273_v28 = vld [vmem:[%s2645_s1 + $0x70] sm:$0xf]  ;;  %v1690_v29 = vld [vmem:[%s2645_s1 + $0x74] sm:$0xf0]  ;;  %v1154_v35 = vor.u32 %v1724_v22, %v1153_v21  ;;  %v1094_v36 = vor.u32 %v1707_v23, %v1091_v25 }
  0x17   :  { %v1337_v30 = vld [vmem:[%s2645_s1 + $0xf0] sm:$0xf]  ;;  %v1706_v32 = vld [vmem:[%s2645_s1 + $0xf4] sm:$0xf0]  ;;  %v1689_v33 = vld [vmem:[%s2645_s1 + $0x74] sm:$0xf]  ;;  %v1158_v39 = vor.u32 %v1723_v26, %v1155_v27  ;;  %v1274_v40 = vor.u32 %v1690_v29, %v1273_v28 }
  0x18   :  { %266 = vmatpush.bf16.msra.mxu0 %v1106_v4  ;;  %v1275_v34 = vld [vmem:[%s2645_s1 + $0x78] sm:$0xf0]  ;;  %v1705_v37 = vld [vmem:[%s2645_s1 + $0xf4] sm:$0xf]  ;;  %v1265_v41 = vld [vmem:[%s2645_s1 + $0x60] sm:$0xf]  ;;  %v1338_v42 = vor.u32 %v1706_v32, %v1337_v30 }
  0x19   :  { %280 = vmatpush.bf16.msra.mxu1 %v1170_v5  ;;  %294 = vmatpush.bf16.msra.mxu2 %v1110_v6  ;;  %v1339_v38 = vld [vmem:[%s2645_s1 + $0xf8] sm:$0xf0]  ;;  %v1278_v43 = vor.u32 %v1689_v33, %v1275_v34  ;;  %v1688_v44 = vld [vmem:[%s2645_s1 + $0x64] sm:$0xf0]  ;;  %v1329_v45 = vld [vmem:[%s2645_s1 + $0xe0] sm:$0xf] }
  0x1a   :  { %308 = vmatpush.bf16.msra.mxu3 %v1174_v10  ;;  %v1704_v46 = vld [vmem:[%s2645_s1 + $0xe4] sm:$0xf0]  ;;  %v1342_v47 = vor.u32 %v1705_v37, %v1339_v38  ;;  %v1687_v48 = vld [vmem:[%s2645_s1 + $0x64] sm:$0xf]  ;;  %v1267_v49 = vld [vmem:[%s2645_s1 + $0x68] sm:$0xf0]  ;;  %v1266_v54 = vor.u32 %v1688_v44, %v1265_v41 }
  0x1b   :  { %v1703_v50 = vld [vmem:[%s2645_s1 + $0xe4] sm:$0xf]  ;;  %v1331_v51 = vld [vmem:[%s2645_s1 + $0xe8] sm:$0xf0]  ;;  %v1081_v52 = vld [vmem:[%s2646_s0] sm:$0xf]  ;;  %v1330_v58 = vor.u32 %v1704_v46, %v1329_v45  ;;  %v1270_v59 = vor.u32 %v1687_v48, %v1267_v49 }
  0x1c   :  { %267 = vmatpush.bf16.msra.mxu0 %v1098_v16  ;;  %v1674_v53 = vld [vmem:[%s2646_s0 + $0xc] sm:$0xf0]  ;;  %v1686_v56 = vld [vmem:[%s2645_s1 + $0x54] sm:$0xf0]  ;;  %v1685_v62 = vld [vmem:[%s2645_s1 + $0x54] sm:$0xf]  ;;  %v1334_v63 = vor.u32 %v1703_v50, %v1331_v51 }
  0x1d   :  { %281 = vmatpush.bf16.msra.mxu1 %v1162_v19  ;;  %295 = vmatpush.bf16.msra.mxu2 %v1102_v20  ;;  %v1257_v55 = vld [vmem:[%s2645_s1 + $0x50] sm:$0xf]  ;;  %v2077_v57 = vor.u32 %v1674_v53, %v1081_v52  ;;  %v1702_v61 = vld [vmem:[%s2645_s1 + $0xd4] sm:$0xf0]  ;;  %v1259_v0 = vld [vmem:[%s2645_s1 + $0x58] sm:$0xf0] }
  0x1e   :  { %309 = vmatpush.bf16.msra.mxu3 %v1166_v24  ;;  %v1321_v60 = vld [vmem:[%s2645_s1 + $0xd0] sm:$0xf]  ;;  %v1673_v1 = vld [vmem:[%s2646_s0 + $0x4] sm:$0xf]  ;;  %v1083_v2 = vld [vmem:[%s2646_s0 + $0x10] sm:$0xf0]  ;;  %v1258_v6 = vor.u32 %v1686_v56, %v1257_v55  ;;  %v1262_v8 = vor.u32 %v1685_v62, %v1259_v0 }
  0x1f   :  { %v1701_v3 = vld [vmem:[%s2645_s1 + $0xd4] sm:$0xf]  ;;  %v1323_v4 = vld [vmem:[%s2645_s1 + $0xd8] sm:$0xf0]  ;;  %v2105_v5 = vor.u32 %v1673_v1, %v1083_v2  ;;  %v1322_v7 = vor.u32 %v1702_v61, %v1321_v60  ;;  %v1249_v9 = vld [vmem:[%s2645_s1 + $0x40] sm:$0xf] }
  0x20   :  { %268 = vmatpush.bf16.msra.mxu0 %v1090_v31  ;;  %v1684_v10 = vld [vmem:[%s2645_s1 + $0x44] sm:$0xf0]  ;;  %v1313_v11 = vld [vmem:[%s2645_s1 + $0xc0] sm:$0xf]  ;;  %v1326_v12 = vor.u32 %v1701_v3, %v1323_v4  ;;  %v1683_v14 = vld [vmem:[%s2645_s1 + $0x44] sm:$0xf] }
  0x21   :  { %282 = vmatpush.bf16.msra.mxu1 %v1154_v35  ;;  %296 = vmatpush.bf16.msra.mxu2 %v1094_v36  ;;  %v1700_v13 = vld [vmem:[%s2645_s1 + $0xc4] sm:$0xf0]  ;;  %v1251_v15 = vld [vmem:[%s2645_s1 + $0x48] sm:$0xf0]  ;;  %v1699_v16 = vld [vmem:[%s2645_s1 + $0xc4] sm:$0xf]  ;;  %v1250_v18 = vor.u32 %v1684_v10, %v1249_v9 }
  0x22   :  { %310 = vmatpush.bf16.msra.mxu3 %v1158_v39  ;;  %v1315_v17 = vld [vmem:[%s2645_s1 + $0xc8] sm:$0xf0]  ;;  %v1314_v19 = vor.u32 %v1700_v13, %v1313_v11  ;;  %v1254_v20 = vor.u32 %v1683_v14, %v1251_v15  ;;  %v1241_v21 = vld [vmem:[%s2645_s1 + $0x30] sm:$0xf]  ;;  %v1682_v22 = vld [vmem:[%s2645_s1 + $0x34] sm:$0xf0] }
  0x23   :  { %269 = vmatmul.bf16.vlgmr.msra.gmra.mxu0 %v2077_v57  ;;  %v1305_v23 = vld [vmem:[%s2645_s1 + $0xb0] sm:$0xf]  ;;  %v1318_v24 = vor.u32 %v1699_v16, %v1315_v17  ;;  %v1698_v25 = vld [vmem:[%s2645_s1 + $0xb4] sm:$0xf0]  ;;  %v1681_v26 = vld [vmem:[%s2645_s1 + $0x34] sm:$0xf]  ;;  %v1242_v30 = vor.u32 %v1682_v22, %v1241_v21 }
  0x24   :  { %477 = vmatpush.bf16.msrb.mxu0 %v1274_v40  ;;  %297 = vmatmul.bf16.vlgmr.msra.gmra.mxu2 %v2077_v57  ;;  %v1243_v27 = vld [vmem:[%s2645_s1 + $0x38] sm:$0xf0]  ;;  %v1697_v28 = vld [vmem:[%s2645_s1 + $0xb4] sm:$0xf]  ;;  %v1306_v31 = vor.u32 %v1698_v25, %v1305_v23  ;;  %v1233_v33 = vld [vmem:[%s2645_s1 + $0x20] sm:$0xf] }
  0x25   :  { %491 = vmatpush.bf16.msrb.mxu1 %v1338_v42  ;;  %505 = vmatpush.bf16.msrb.mxu2 %v1278_v43  ;;  %v1307_v29 = vld [vmem:[%s2645_s1 + $0xb8] sm:$0xf0]  ;;  %v1246_v32 = vor.u32 %v1681_v26, %v1243_v27  ;;  %v1680_v34 = vld [vmem:[%s2645_s1 + $0x24] sm:$0xf0]  ;;  %v1297_v35 = vld [vmem:[%s2645_s1 + $0xa0] sm:$0xf] }
  0x26   :  { %519 = vmatpush.bf16.msrb.mxu3 %v1342_v47  ;;  %283 = vmatmul.bf16.vlgmr.msra.gmra.mxu1 %v2105_v5  ;;  %v1310_v36 = vor.u32 %v1697_v28, %v1307_v29  ;;  %v1696_v37 = vld [vmem:[%s2645_s1 + $0xa4] sm:$0xf0]  ;;  %v1679_v38 = vld [vmem:[%s2645_s1 + $0x24] sm:$0xf]  ;;  %v1235_v39 = vld [vmem:[%s2645_s1 + $0x28] sm:$0xf0]  ;;  %v1234_v42 = vor.u32 %v1680_v34, %v1233_v33 }
  0x27   :  { %311 = vmatmul.bf16.vlgmr.msra.gmra.mxu3 %v2105_v5  ;;  %v1695_v40 = vld [vmem:[%s2645_s1 + $0xa4] sm:$0xf]  ;;  %v1299_v41 = vld [vmem:[%s2645_s1 + $0xa8] sm:$0xf0]  ;;  %v1298_v43 = vor.u32 %v1696_v37, %v1297_v35  ;;  %v1238_v44 = vor.u32 %v1679_v38, %v1235_v39  ;;  %v1225_v45 = vld [vmem:[%s2645_s1 + $0x10] sm:$0xf] }
  0x28   :  { %478 = vmatpush.bf16.msrb.mxu0 %v1266_v54  ;;  %v1678_v46 = vld [vmem:[%s2645_s1 + $0x14] sm:$0xf0]  ;;  %v1289_v47 = vld [vmem:[%s2645_s1 + $0x90] sm:$0xf]  ;;  %v1302_v48 = vor.u32 %v1695_v40, %v1299_v41  ;;  %v1677_v50 = vld [vmem:[%s2645_s1 + $0x14] sm:$0xf] }
  0x29   :  { %492 = vmatpush.bf16.msrb.mxu1 %v1330_v58  ;;  %506 = vmatpush.bf16.msrb.mxu2 %v1270_v59  ;;  %v1694_v49 = vld [vmem:[%s2645_s1 + $0x94] sm:$0xf0]  ;;  %v1227_v51 = vld [vmem:[%s2645_s1 + $0x18] sm:$0xf0]  ;;  %v1693_v52 = vld [vmem:[%s2645_s1 + $0x94] sm:$0xf]  ;;  %v1226_v54 = vor.u32 %v1678_v46, %v1225_v45 }
  0x2a   :  { %520 = vmatpush.bf16.msrb.mxu3 %v1334_v63  ;;  %v1291_v53 = vld [vmem:[%s2645_s1 + $0x98] sm:$0xf0]  ;;  %v1217_v55 = vld [vmem:[%s2645_s1] sm:$0xf]  ;;  %v1676_v56 = vld [vmem:[%s2645_s1 + $0x4] sm:$0xf0]  ;;  %v1290_v58 = vor.u32 %v1694_v49, %v1289_v47  ;;  %v1230_v59 = vor.u32 %v1677_v50, %v1227_v51 }
  0x2b   :  { %v1281_v60 = vld [vmem:[%s2645_s1 + $0x80] sm:$0xf]  ;;  %v1692_v61 = vld [vmem:[%s2645_s1 + $0x84] sm:$0xf0]  ;;  %v1675_v62 = vld [vmem:[%s2645_s1 + $0x4] sm:$0xf]  ;;  %v1294_v63 = vor.u32 %v1693_v52, %v1291_v53 }
  0x2c   :  { %479 = vmatpush.bf16.msrb.mxu0 %v1258_v6  ;;  %v1219_v0 = vld [vmem:[%s2645_s1 + $0x8] sm:$0xf0]  ;;  %v1691_v1 = vld [vmem:[%s2645_s1 + $0x84] sm:$0xf]  ;;  %v1443_v3 = vld [vmem:[%s2645_s1 + $0x170] sm:$0xf]  ;;  %v1282_v11 = vor.u32 %v1692_v61, %v1281_v60 }
  0x2d   :  { %493 = vmatpush.bf16.msrb.mxu1 %v1322_v7  ;;  %507 = vmatpush.bf16.msrb.mxu2 %v1262_v8  ;;  %v1283_v2 = vld [vmem:[%s2645_s1 + $0x88] sm:$0xf0]  ;;  %v1756_v4 = vld [vmem:[%s2645_s1 + $0x174] sm:$0xf0]  ;;  %v1507_v6 = vld [vmem:[%s2645_s1 + $0x1f0] sm:$0xf]  ;;  %v1218_v7 = vor.u32 %v1676_v56, %v1217_v55 }
  0x2e   :  { %521 = vmatpush.bf16.msrb.mxu3 %v1326_v12  ;;  %v1772_v8 = vld [vmem:[%s2645_s1 + $0x1f4] sm:$0xf0]  ;;  %v1755_v9 = vld [vmem:[%s2645_s1 + $0x174] sm:$0xf]  ;;  %v1445_v10 = vld [vmem:[%s2645_s1 + $0x178] sm:$0xf0]  ;;  %v1222_v12 = vor.u32 %v1675_v62, %v1219_v0  ;;  %v1286_v15 = vor.u32 %v1691_v1, %v1283_v2  ;;  %v1444_v16 = vor.u32 %v1756_v4, %v1443_v3 }
  0x2f   :  { %v1771_v13 = vld [vmem:[%s2645_s1 + $0x1f4] sm:$0xf]  ;;  %v1509_v14 = vld [vmem:[%s2645_s1 + $0x1f8] sm:$0xf0]  ;;  %v1508_v17 = vor.u32 %v1772_v8, %v1507_v6  ;;  %v1499_v21 = vld [vmem:[%s2645_s1 + $0x1e0] sm:$0xf] }
  0x30   :  { %480 = vmatpush.bf16.msrb.mxu0 %v1250_v18  ;;  %v1448_v18 = vor.u32 %v1755_v9, %v1445_v10  ;;  %v1512_v22 = vor.u32 %v1771_v13, %v1509_v14  ;;  %v1770_v23 = vld [vmem:[%s2645_s1 + $0x1e4] sm:$0xf0]  ;;  %v1437_v25 = vld [vmem:[%s2645_s1 + $0x168] sm:$0xf0]  ;;  %v1769_v26 = vld [vmem:[%s2645_s1 + $0x1e4] sm:$0xf] }
  0x31   :  { %494 = vmatpush.bf16.msrb.mxu1 %v1314_v19  ;;  %508 = vmatpush.bf16.msrb.mxu2 %v1254_v20  ;;  %v1435_v19 = vld [vmem:[%s2645_s1 + $0x160] sm:$0xf]  ;;  %v1754_v20 = vld [vmem:[%s2645_s1 + $0x164] sm:$0xf0]  ;;  %v1501_v27 = vld [vmem:[%s2645_s1 + $0x1e8] sm:$0xf0]  ;;  %v1500_v29 = vor.u32 %v1770_v23, %v1499_v21 }
  0x32   :  { %522 = vmatpush.bf16.msrb.mxu3 %v1318_v24  ;;  %v1753_v24 = vld [vmem:[%s2645_s1 + $0x164] sm:$0xf]  ;;  %v1436_v28 = vor.u32 %v1754_v20, %v1435_v19  ;;  %v1491_v33 = vld [vmem:[%s2645_s1 + $0x1d0] sm:$0xf]  ;;  %v1504_v34 = vor.u32 %v1769_v26, %v1501_v27  ;;  %v1768_v35 = vld [vmem:[%s2645_s1 + $0x1d4] sm:$0xf0] }
  0x33   :  { %v1429_v37 = vld [vmem:[%s2645_s1 + $0x158] sm:$0xf0]  ;;  %v1767_v38 = vld [vmem:[%s2645_s1 + $0x1d4] sm:$0xf]  ;;  %v1492_v41 = vor.u32 %v1768_v35, %v1491_v33  ;;  %v1766_v45 = vld [vmem:[%s2645_s1 + $0x1c4] sm:$0xf0] }
  0x34   :  { %481 = vmatpush.bf16.msrb.mxu0 %v1242_v30  ;;  %v1440_v30 = vor.u32 %v1753_v24, %v1437_v25  ;;  %v1493_v39 = vld [vmem:[%s2645_s1 + $0x1d8] sm:$0xf0]  ;;  %v1749_v46 = vld [vmem:[%s2645_s1 + $0x144] sm:$0xf]  ;;  %v1421_v47 = vld [vmem:[%s2645_s1 + $0x148] sm:$0xf0] }
  0x35   :  { %495 = vmatpush.bf16.msrb.mxu1 %v1306_v31  ;;  %509 = vmatpush.bf16.msrb.mxu2 %v1246_v32  ;;  %v1427_v31 = vld [vmem:[%s2645_s1 + $0x150] sm:$0xf]  ;;  %v1752_v32 = vld [vmem:[%s2645_s1 + $0x154] sm:$0xf0]  ;;  %v1485_v49 = vld [vmem:[%s2645_s1 + $0x1c8] sm:$0xf0]  ;;  %v1424_v52 = vor.u32 %v1749_v46, %v1421_v47 }
  0x36   :  { %523 = vmatpush.bf16.msrb.mxu3 %v1310_v36  ;;  %v1751_v36 = vld [vmem:[%s2645_s1 + $0x154] sm:$0xf]  ;;  %v1428_v40 = vor.u32 %v1752_v32, %v1427_v31  ;;  %v1411_v53 = vld [vmem:[%s2645_s1 + $0x130] sm:$0xf]  ;;  %v1413_v60 = vld [vmem:[%s2645_s1 + $0x138] sm:$0xf0] }
  0x37   :  { %v1475_v55 = vld [vmem:[%s2645_s1 + $0x1b0] sm:$0xf]  ;;  %v1763_v61 = vld [vmem:[%s2645_s1 + $0x1b4] sm:$0xf]  ;;  %v1477_v62 = vld [vmem:[%s2645_s1 + $0x1b8] sm:$0xf0] }
  0x38   :  { %482 = vmatpush.bf16.msrb.mxu0 %v1234_v42  ;;  %v1432_v42 = vor.u32 %v1751_v36, %v1429_v37  ;;  %v1403_v2 = vld [vmem:[%s2645_s1 + $0x120] sm:$0xf]  ;;  %v1746_v3 = vld [vmem:[%s2645_s1 + $0x124] sm:$0xf0]  ;;  %v1480_v6 = vor.u32 %v1763_v61, %v1477_v62  ;;  %v1745_v8 = vld [vmem:[%s2645_s1 + $0x124] sm:$0xf] }
  0x39   :  { %496 = vmatpush.bf16.msrb.mxu1 %v1298_v43  ;;  %510 = vmatpush.bf16.msrb.mxu2 %v1238_v44  ;;  %v1750_v43 = vld [vmem:[%s2645_s1 + $0x144] sm:$0xf0]  ;;  %v1483_v44 = vld [vmem:[%s2645_s1 + $0x1c0] sm:$0xf]  ;;  %v1405_v9 = vld [vmem:[%s2645_s1 + $0x128] sm:$0xf0] }
  0x3a   :  { %524 = vmatpush.bf16.msrb.mxu3 %v1302_v48  ;;  %v1765_v48 = vld [vmem:[%s2645_s1 + $0x1c4] sm:$0xf]  ;;  %v1484_v51 = vor.u32 %v1766_v45, %v1483_v44  ;;  %v1467_v4 = vld [vmem:[%s2645_s1 + $0x1a0] sm:$0xf]  ;;  %v1408_v14 = vor.u32 %v1745_v8, %v1405_v9  ;;  %v1760_v19 = vld [vmem:[%s2645_s1 + $0x194] sm:$0xf0] }
  0x3b   :  { %v1488_v56 = vor.u32 %v1765_v48, %v1485_v49  ;;  %v1761_v10 = vld [vmem:[%s2645_s1 + $0x1a4] sm:$0xf]  ;;  %v1743_v20 = vld [vmem:[%s2645_s1 + $0x114] sm:$0xf]  ;;  %v1397_v21 = vld [vmem:[%s2645_s1 + $0x118] sm:$0xf0] }
  0x3c   :  { %483 = vmatpush.bf16.msrb.mxu0 %v1226_v54  ;;  %v1748_v54 = vld [vmem:[%s2645_s1 + $0x134] sm:$0xf0]  ;;  %v1461_v23 = vld [vmem:[%s2645_s1 + $0x198] sm:$0xf0]  ;;  %v1387_v25 = vld [vmem:[%s2645_s1 + $0x100] sm:$0xf] }
  0x3d   :  { %497 = vmatpush.bf16.msrb.mxu1 %v1290_v58  ;;  %511 = vmatpush.bf16.msrb.mxu2 %v1230_v59  ;;  %v1764_v58 = vld [vmem:[%s2645_s1 + $0x1b4] sm:$0xf0]  ;;  %v1747_v59 = vld [vmem:[%s2645_s1 + $0x134] sm:$0xf]  ;;  %v1742_v26 = vld [vmem:[%s2645_s1 + $0x104] sm:$0xf0] }
  0x3e   :  { %525 = vmatpush.bf16.msrb.mxu3 %v1294_v63  ;;  %v1412_v63 = vor.u32 %v1748_v54, %v1411_v53  ;;  %v1476_v0 = vor.u32 %v1764_v58, %v1475_v55  ;;  %v1416_v1 = vor.u32 %v1747_v59, %v1413_v60  ;;  %v1451_v27 = vld [vmem:[%s2645_s1 + $0x180] sm:$0xf]  ;;  %v1741_v31 = vld [vmem:[%s2645_s1 + $0x104] sm:$0xf]  ;;  %v1389_v32 = vld [vmem:[%s2645_s1 + $0x108] sm:$0xf0] }
  0x3f   :  { %v1453_v35 = vld [vmem:[%s2645_s1 + $0x188] sm:$0xf0]  ;;  %v1603_v36 = vld [vmem:[%s2644_s2 + $0x170] sm:$0xf]  ;;  %v1788_v37 = vld [vmem:[%s2644_s2 + $0x174] sm:$0xf0]  ;;  %v1392_v44 = vor.u32 %v1741_v31, %v1389_v32 }
  0x40   :  { %484 = vmatpush.bf16.msrb.mxu0 %v1218_v7  ;;  %v1762_v7 = vld [vmem:[%s2645_s1 + $0x1a4] sm:$0xf0]  ;;  %v1740_v46 = vld [vmem:[%s2646_s0 + $0x14] sm:$0xf0]  ;;  %v1604_v48 = vor.u32 %v1788_v37, %v1603_v36  ;;  %v1739_v49 = vld [vmem:[%s2646_s0 + $0xc] sm:$0xf] }
  0x41   :  { %498 = vmatpush.bf16.msrb.mxu1 %v1282_v11  ;;  %512 = vmatpush.bf16.msrb.mxu2 %v1222_v12  ;;  %v1469_v11 = vld [vmem:[%s2645_s1 + $0x1a8] sm:$0xf0]  ;;  %v1404_v12 = vor.u32 %v1746_v3, %v1403_v2  ;;  %v1468_v13 = vor.u32 %v1762_v7, %v1467_v4  ;;  %v1379_v45 = vld [vmem:[%s2646_s0 + $0x8] sm:$0xf]  ;;  %v1595_v53 = vld [vmem:[%s2644_s2 + $0x160] sm:$0xf] }
  0x42   :  { %526 = vmatpush.bf16.msrb.mxu3 %v1286_v15  ;;  %v1395_v15 = vld [vmem:[%s2645_s1 + $0x110] sm:$0xf]  ;;  %v1786_v54 = vld [vmem:[%s2644_s2 + $0x164] sm:$0xf0]  ;;  %v1659_v55 = vld [vmem:[%s2644_s2 + $0x1e0] sm:$0xf]  ;;  %v2470_v58 = vor.u32 %v1740_v46, %v1379_v45 }
  0x43   :  { %485 = vmatmul.bf16.vlgmr.msrb.gmra.mxu0 %v2077_v57  ;;  %v1802_v59 = vld [vmem:[%s2644_s2 + $0x1e4] sm:$0xf0]  ;;  %v1785_v60 = vld [vmem:[%s2644_s2 + $0x164] sm:$0xf]  ;;  %v1597_v61 = vld [vmem:[%s2644_s2 + $0x168] sm:$0xf0] }
  0x44   :  { %747 = vmatpush.bf16.msra.mxu0 %v1444_v16  ;;  %513 = vmatmul.bf16.vlgmr.msrb.gmra.mxu2 %v2077_v57  ;;  %v1419_v57 = vld [vmem:[%s2645_s1 + $0x140] sm:$0xf]  ;;  %v1744_v16 = vld [vmem:[%s2645_s1 + $0x114] sm:$0xf0]  ;;  %v1660_v2 = vor.u32 %v1802_v59, %v1659_v55  ;;  %v1600_v3 = vor.u32 %v1785_v60, %v1597_v61  ;;  %v1587_v4 = vld [vmem:[%s2644_s2 + $0x150] sm:$0xf] }
  0x45   :  { %761 = vmatpush.bf16.msra.mxu1 %v1508_v17  ;;  %775 = vmatpush.bf16.msra.mxu2 %v1448_v18  ;;  %v1420_v50 = vor.u32 %v1750_v43, %v1419_v57  ;;  %v1459_v17 = vld [vmem:[%s2645_s1 + $0x190] sm:$0xf]  ;;  %v1472_v18 = vor.u32 %v1761_v10, %v1469_v11  ;;  %v1396_v24 = vor.u32 %v1744_v16, %v1395_v15  ;;  %v1803_v57 = vld [vmem:[%s2644_s2 + $0x1f4] sm:$0xf]  ;;  %v1800_v9 = vld [vmem:[%s2644_s2 + $0x1d4] sm:$0xf0] }
  0x46   :  { %789 = vmatpush.bf16.msra.mxu3 %v1512_v22  ;;  %499 = vmatmul.bf16.vlgmr.msrb.gmra.mxu1 %v2105_v5  ;;  %v1759_v22 = vld [vmem:[%s2645_s1 + $0x194] sm:$0xf]  ;;  %v1651_v7 = vld [vmem:[%s2644_s2 + $0x1d0] sm:$0xf]  ;;  %v1589_v11 = vld [vmem:[%s2644_s2 + $0x158] sm:$0xf0] }
  0x47   :  { %527 = vmatmul.bf16.vlgmr.msrb.gmra.mxu3 %v2105_v5  ;;  %v1496_v5 = vor.u32 %v1767_v38, %v1493_v39  ;;  %v1464_v33 = vor.u32 %v1759_v22, %v1461_v23  ;;  %v1667_v38 = vld [vmem:[%s2644_s2 + $0x1f0] sm:$0xf]  ;;  %v1804_v39 = vld [vmem:[%s2644_s2 + $0x1f4] sm:$0xf0]  ;;  %v1783_v10 = vld [vmem:[%s2644_s2 + $0x154] sm:$0xf]  ;;  %v1652_v15 = vor.u32 %v1800_v9, %v1651_v7 }
  0x48   :  { %748 = vmatpush.bf16.msra.mxu0 %v1436_v28  ;;  %v1460_v28 = vor.u32 %v1760_v19, %v1459_v17  ;;  %v1592_v16 = vor.u32 %v1783_v10, %v1589_v11  ;;  %v1579_v17 = vld [vmem:[%s2644_s2 + $0x140] sm:$0xf]  ;;  %v1781_v22 = vld [vmem:[%s2644_s2 + $0x144] sm:$0xf]  ;;  %v1581_v23 = vld [vmem:[%s2644_s2 + $0x148] sm:$0xf0] }
  0x49   :  { %762 = vmatpush.bf16.msra.mxu1 %v1500_v29  ;;  %776 = vmatpush.bf16.msra.mxu2 %v1440_v30  ;;  %v1400_v29 = vor.u32 %v1743_v20, %v1397_v21  ;;  %v1758_v30 = vld [vmem:[%s2645_s1 + $0x184] sm:$0xf0]  ;;  %v1643_v19 = vld [vmem:[%s2644_s2 + $0x1c0] sm:$0xf]  ;;  %v1635_v31 = vld [vmem:[%s2644_s2 + $0x1b0] sm:$0xf] }
  0x4a   :  { %790 = vmatpush.bf16.msra.mxu3 %v1504_v34  ;;  %v1757_v34 = vld [vmem:[%s2645_s1 + $0x184] sm:$0xf]  ;;  %v1452_v43 = vor.u32 %v1758_v30, %v1451_v27  ;;  %v1798_v21 = vld [vmem:[%s2644_s2 + $0x1c4] sm:$0xf0]  ;;  %v1780_v30 = vld [vmem:[%s2644_s2 + $0x134] sm:$0xf0] }
  0x4b   :  { %v1456_v47 = vor.u32 %v1757_v34, %v1453_v35  ;;  %v1644_v27 = vor.u32 %v1798_v21, %v1643_v19  ;;  %v1779_v34 = vld [vmem:[%s2644_s2 + $0x134] sm:$0xf]  ;;  %v1573_v35 = vld [vmem:[%s2644_s2 + $0x138] sm:$0xf0]  ;;  %v1565_v45 = vld [vmem:[%s2644_s2 + $0x128] sm:$0xf0] }
  0x4c   :  { %749 = vmatpush.bf16.msra.mxu0 %v1428_v40  ;;  %v1388_v40 = vor.u32 %v1742_v26, %v1387_v25  ;;  %v1645_v25 = vld [vmem:[%s2644_s2 + $0x1c8] sm:$0xf0]  ;;  %v1795_v36 = vld [vmem:[%s2644_s2 + $0x1b4] sm:$0xf]  ;;  %v1637_v37 = vld [vmem:[%s2644_s2 + $0x1b8] sm:$0xf0] }
  0x4d   :  { %763 = vmatpush.bf16.msra.mxu1 %v1492_v41  ;;  %777 = vmatpush.bf16.msra.mxu2 %v1432_v42  ;;  %v1787_v41 = vld [vmem:[%s2644_s2 + $0x174] sm:$0xf]  ;;  %v1605_v42 = vld [vmem:[%s2644_s2 + $0x178] sm:$0xf0]  ;;  %v1793_v46 = vld [vmem:[%s2644_s2 + $0x1a4] sm:$0xf] }
  0x4e   :  { %791 = vmatpush.bf16.msra.mxu3 %v1496_v5  ;;  %v1669_v5 = vld [vmem:[%s2644_s2 + $0x1f8] sm:$0xf0]  ;;  %v1792_v55 = vld [vmem:[%s2644_s2 + $0x194] sm:$0xf0]  ;;  %v1791_v60 = vld [vmem:[%s2644_s2 + $0x194] sm:$0xf] }
  0x4f   :  { %v1557_v59 = vld [vmem:[%s2644_s2 + $0x118] sm:$0xf0]  ;;  %v1790_v7 = vld [vmem:[%s2644_s2 + $0x184] sm:$0xf0]  ;;  %v1549_v9 = vld [vmem:[%s2644_s2 + $0x108] sm:$0xf0] }
  0x50   :  { %750 = vmatpush.bf16.msra.mxu0 %v1420_v50  ;;  %v1381_v50 = vld [vmem:[%s2646_s0 + $0x18] sm:$0xf0]  ;;  %v1789_v10 = vld [vmem:[%s2644_s2 + $0x184] sm:$0xf]  ;;  %v1613_v11 = vld [vmem:[%s2644_s2 + $0x188] sm:$0xf0] }
  0x51   :  { %764 = vmatpush.bf16.msra.mxu1 %v1484_v51  ;;  %778 = vmatpush.bf16.msra.mxu2 %v1424_v52  ;;  %v1668_v51 = vor.u32 %v1804_v39, %v1667_v38  ;;  %v1608_v52 = vor.u32 %v1787_v41, %v1605_v42  ;;  %v2481_v62 = vor.u32 %v1739_v49, %v1381_v50  ;;  %v1563_v41 = vld [vmem:[%s2644_s2 + $0x120] sm:$0xf]  ;;  %v1778_v42 = vld [vmem:[%s2644_s2 + $0x124] sm:$0xf0]  ;;  %v1621_v61 = vld [vmem:[%s2644_s2 + $0x198] sm:$0xf0] }
  0x52   :  { %792 = vmatpush.bf16.msra.mxu3 %v1488_v56  ;;  %v1672_v56 = vor.u32 %v1803_v57, %v1669_v5  ;;  %v1627_v57 = vld [vmem:[%s2644_s2 + $0x1a0] sm:$0xf]  ;;  %v1777_v5 = vld [vmem:[%s2644_s2 + $0x124] sm:$0xf] }
  0x53   :  { %v1568_v50 = vor.u32 %v1777_v5, %v1565_v45 }
  0x54   :  { %751 = vmatpush.bf16.msra.mxu0 %v1412_v63  ;;  %v1801_v63 = vld [vmem:[%s2644_s2 + $0x1e4] sm:$0xf] }
  0x55   :  { %765 = vmatpush.bf16.msra.mxu1 %v1476_v0  ;;  %779 = vmatpush.bf16.msra.mxu2 %v1416_v1  ;;  %v1661_v0 = vld [vmem:[%s2644_s2 + $0x1e8] sm:$0xf0]  ;;  %v1596_v1 = vor.u32 %v1786_v54, %v1595_v53  ;;  %v1619_v53 = vld [vmem:[%s2644_s2 + $0x190] sm:$0xf] }
  0x56   :  { %793 = vmatpush.bf16.msra.mxu3 %v1480_v6  ;;  %v1784_v6 = vld [vmem:[%s2644_s2 + $0x154] sm:$0xf0]  ;;  %v1664_v8 = vor.u32 %v1801_v63, %v1661_v0  ;;  %v1620_v0 = vor.u32 %v1792_v55, %v1619_v53 }
  0x58   :  { %752 = vmatpush.bf16.msra.mxu0 %v1404_v12  ;;  %v1799_v12 = vld [vmem:[%s2644_s2 + $0x1d4] sm:$0xf] }
  0x59   :  { %766 = vmatpush.bf16.msra.mxu1 %v1468_v13  ;;  %780 = vmatpush.bf16.msra.mxu2 %v1408_v14  ;;  %v1653_v13 = vld [vmem:[%s2644_s2 + $0x1d8] sm:$0xf0]  ;;  %v1588_v14 = vor.u32 %v1784_v6, %v1587_v4  ;;  %v1611_v4 = vld [vmem:[%s2644_s2 + $0x180] sm:$0xf]  ;;  %v1624_v6 = vor.u32 %v1791_v60, %v1621_v61 }
  0x5a   :  { %794 = vmatpush.bf16.msra.mxu3 %v1472_v18  ;;  %v1782_v18 = vld [vmem:[%s2644_s2 + $0x144] sm:$0xf0]  ;;  %v1656_v20 = vor.u32 %v1799_v12, %v1653_v13  ;;  %v1612_v13 = vor.u32 %v1790_v7, %v1611_v4 }
  0x5b   :  { %v1580_v26 = vor.u32 %v1782_v18, %v1579_v17 }
  0x5c   :  { %753 = vmatpush.bf16.msra.mxu0 %v1396_v24  ;;  %v1797_v24 = vld [vmem:[%s2644_s2 + $0x1c4] sm:$0xf] }
  0x5d   :  { %767 = vmatpush.bf16.msra.mxu1 %v1460_v28  ;;  %781 = vmatpush.bf16.msra.mxu2 %v1400_v29  ;;  %v1584_v28 = vor.u32 %v1781_v22, %v1581_v23  ;;  %v1571_v29 = vld [vmem:[%s2644_s2 + $0x130] sm:$0xf]  ;;  %v1648_v32 = vor.u32 %v1797_v24, %v1645_v25 }
  0x5e   :  { %795 = vmatpush.bf16.msra.mxu3 %v1464_v33  ;;  %v1796_v33 = vld [vmem:[%s2644_s2 + $0x1b4] sm:$0xf0]  ;;  %v1572_v38 = vor.u32 %v1780_v30, %v1571_v29 }
  0x5f   :  { %v1636_v39 = vor.u32 %v1796_v33, %v1635_v31 }
  0x60   :  { %754 = vmatpush.bf16.msra.mxu0 %v1388_v40  ;;  %v1576_v40 = vor.u32 %v1779_v34, %v1573_v35 }
  0x61   :  { %768 = vmatpush.bf16.msra.mxu1 %v1452_v43  ;;  %782 = vmatpush.bf16.msra.mxu2 %v1392_v44  ;;  %v1640_v43 = vor.u32 %v1795_v36, %v1637_v37  ;;  %v1794_v44 = vld [vmem:[%s2644_s2 + $0x1a4] sm:$0xf0] }
  0x62   :  { %796 = vmatpush.bf16.msra.mxu3 %v1456_v47  ;;  %v1629_v47 = vld [vmem:[%s2644_s2 + $0x1a8] sm:$0xf0]  ;;  %v1628_v49 = vor.u32 %v1794_v44, %v1627_v57 }
  0x63   :  { %755 = vmatmul.bf16.vlgmr.msra.gmra.mxu0 %v2470_v58  ;;  %v1632_v54 = vor.u32 %v1793_v46, %v1629_v47 }
  0x64   :  { %1001 = vmatpush.bf16.msrb.mxu0 %v1604_v48  ;;  %769 = vmatmul.bf16.vlgmr.msra.gmra.mxu1 %v2481_v62  ;;  %v1564_v48 = vor.u32 %v1778_v42, %v1563_v41 }
  0x65   :  { %1015 = vmatpush.bf16.msrb.mxu1 %v1668_v51  ;;  %1029 = vmatpush.bf16.msrb.mxu2 %v1608_v52  ;;  %v1555_v51 = vld [vmem:[%s2644_s2 + $0x110] sm:$0xf]  ;;  %v1776_v52 = vld [vmem:[%s2644_s2 + $0x114] sm:$0xf0] }
  0x66   :  { %1043 = vmatpush.bf16.msrb.mxu3 %v1672_v56  ;;  %783 = vmatmul.bf16.vlgmr.msra.gmra.mxu2 %v2470_v58  ;;  %v1775_v56 = vld [vmem:[%s2644_s2 + $0x114] sm:$0xf]  ;;  %v1556_v63 = vor.u32 %v1776_v52, %v1555_v51 }
  0x67   :  { %797 = vmatmul.bf16.vlgmr.msra.gmra.mxu3 %v2481_v62 }
  0x68   :  { %1002 = vmatpush.bf16.msrb.mxu0 %v1596_v1  ;;  %v1560_v1 = vor.u32 %v1775_v56, %v1557_v59 }
  0x69   :  { %1016 = vmatpush.bf16.msrb.mxu1 %v1660_v2  ;;  %1030 = vmatpush.bf16.msrb.mxu2 %v1600_v3  ;;  %v1547_v2 = vld [vmem:[%s2644_s2 + $0x100] sm:$0xf]  ;;  %v1774_v3 = vld [vmem:[%s2644_s2 + $0x104] sm:$0xf0] }
  0x6a   :  { %1044 = vmatpush.bf16.msrb.mxu3 %v1664_v8  ;;  %v1773_v8 = vld [vmem:[%s2644_s2 + $0x104] sm:$0xf]  ;;  %v1548_v12 = vor.u32 %v1774_v3, %v1547_v2 }
  0x6c   :  { %1003 = vmatpush.bf16.msrb.mxu0 %v1588_v14  ;;  %v1552_v14 = vor.u32 %v1773_v8, %v1549_v9 }
  0x6d   :  { %1017 = vmatpush.bf16.msrb.mxu1 %v1652_v15  ;;  %1031 = vmatpush.bf16.msrb.mxu2 %v1592_v16  ;;  %v1616_v15 = vor.u32 %v1789_v10, %v1613_v11 }
  0x6e   :  { %1045 = vmatpush.bf16.msrb.mxu3 %v1656_v20 }
  0x70   :  { %1004 = vmatpush.bf16.msrb.mxu0 %v1580_v26 }
  0x71   :  { %1018 = vmatpush.bf16.msrb.mxu1 %v1644_v27  ;;  %1032 = vmatpush.bf16.msrb.mxu2 %v1584_v28 }
  0x72   :  { %1046 = vmatpush.bf16.msrb.mxu3 %v1648_v32 }
  0x74   :  { %1005 = vmatpush.bf16.msrb.mxu0 %v1572_v38 }
  0x75   :  { %1019 = vmatpush.bf16.msrb.mxu1 %v1636_v39  ;;  %1033 = vmatpush.bf16.msrb.mxu2 %v1576_v40 }
  0x76   :  { %1047 = vmatpush.bf16.msrb.mxu3 %v1640_v43 }
  0x78   :  { %1006 = vmatpush.bf16.msrb.mxu0 %v1564_v48 }
  0x79   :  { %1020 = vmatpush.bf16.msrb.mxu1 %v1628_v49  ;;  %1034 = vmatpush.bf16.msrb.mxu2 %v1568_v50 }
  0x7a   :  { %1048 = vmatpush.bf16.msrb.mxu3 %v1632_v54 }
  0x7c   :  { %1007 = vmatpush.bf16.msrb.mxu0 %v1556_v63 }
  0x7d   :  { %1021 = vmatpush.bf16.msrb.mxu1 %v1620_v0  ;;  %1035 = vmatpush.bf16.msrb.mxu2 %v1560_v1 }
  0x7e   :  { %1049 = vmatpush.bf16.msrb.mxu3 %v1624_v6 }
  0x80   :  { %1008 = vmatpush.bf16.msrb.mxu0 %v1548_v12 }
  0x81   :  { %1022 = vmatpush.bf16.msrb.mxu1 %v1612_v13  ;;  %1036 = vmatpush.bf16.msrb.mxu2 %v1552_v14 }
  0x82   :  { %1050 = vmatpush.bf16.msrb.mxu3 %v1616_v15 }
  0x83   :  { %1009 = vmatmul.bf16.vlgmr.msrb.gmra.mxu0 %v2470_v58 }
  0x84   :  { %1023 = vmatmul.bf16.vlgmr.msrb.gmra.mxu1 %v2481_v62  ;;  %1037 = vmatmul.bf16.vlgmr.msrb.gmra.mxu2 %v2470_v58 }
  0x85   :  { %1051 = vmatmul.bf16.vlgmr.msrb.gmra.mxu3 %v2481_v62 }
  0xa0   :  { %v270_v16 = vpop.f32.mrf.mxu0 }
  0xa3   :  { %v284_v17 = vpop.f32.mrf.mxu1 }
  0xa4   :  { %v285_v41 = vadd.f32 %v284_v17, %v270_v16 }
  0xa7   :  { %v298_v18 = vpop.f32.mrf.mxu2 }
  0xa8   :  { %v272_v20 = vpop.f32.mrf.mxu0 }
  0xaa   :  { %v312_v19 = vpop.f32.mrf.mxu3 }
  0xab   :  { %v286_v21 = vpop.f32.mrf.mxu1  ;;  %v313_v40 = vadd.f32 %v312_v19, %v298_v18 }
  0xac   :  { %v287_v42 = vadd.f32 %v286_v21, %v272_v20 }
  0xaf   :  { %v300_v22 = vpop.f32.mrf.mxu2 }
  0xb2   :  { %v314_v23 = vpop.f32.mrf.mxu3 }
  0xb3   :  { %v315_v46 = vadd.f32 %v314_v23, %v300_v22 }
  0xc0   :  { %v486_v24 = vpop.f32.mrf.mxu0 }
  0xc1   :  { %v487_v44 = vadd.f32 %v486_v24, %v285_v41 }
  0xc3   :  { %v500_v25 = vpop.f32.mrf.mxu1 }
  0xc4   :  { %v501_v55 = vadd.f32 %v500_v25, %v487_v44 }
  0xc7   :  { %v514_v26 = vpop.f32.mrf.mxu2 }
  0xc8   :  { %v488_v28 = vpop.f32.mrf.mxu0  ;;  %v515_v57 = vadd.f32 %v514_v26, %v313_v40 }
  0xc9   :  { %v489_v5 = vadd.f32 %v488_v28, %v287_v42 }
  0xca   :  { %v528_v27 = vpop.f32.mrf.mxu3 }
  0xcb   :  { %v502_v29 = vpop.f32.mrf.mxu1  ;;  %v529_v48 = vadd.f32 %v528_v27, %v515_v57 }
  0xcc   :  { %v503_v56 = vadd.f32 %v502_v29, %v489_v5 }
  0xcf   :  { %v516_v30 = vpop.f32.mrf.mxu2 }
  0xd0   :  { %v517_v51 = vadd.f32 %v516_v30, %v315_v46 }
  0xd2   :  { %v530_v31 = vpop.f32.mrf.mxu3 }
  0xd3   :  { %v531_v0 = vadd.f32 %v530_v31, %v517_v51 }
  0xe0   :  { %v756_v32 = vpop.f32.mrf.mxu0 }
  0xe1   :  { %v770_v58 = vpop.f32.mrf.mxu1 }
  0xe2   :  { %v771_v52 = vadd.f32 %v770_v58, %v756_v32 }
  0xe4   :  { %v803_v1 = vadd.f32 %v771_v52, %v501_v55 }
  0xe8   :  { %v758_v34 = vpop.f32.mrf.mxu0 }
  0xe9   :  { %v784_v33 = vpop.f32.mrf.mxu2  ;;  %v772_v35 = vpop.f32.mrf.mxu1 }
  0xea   :  { %v798_v62 = vpop.f32.mrf.mxu3  ;;  %v773_v53 = vadd.f32 %v772_v35, %v758_v34 }
  0xeb   :  { %v799_v47 = vadd.f32 %v798_v62, %v784_v33 }
  0xec   :  { %v805_v2 = vadd.f32 %v773_v53, %v503_v56 }
  0xed   :  { %v804_v59 = vadd.f32 %v799_v47, %v529_v48 }
  0xf1   :  { %v786_v36 = vpop.f32.mrf.mxu2 }
  0xf2   :  { %v800_v37 = vpop.f32.mrf.mxu3 }
  0xf3   :  { %v801_v60 = vadd.f32 %v800_v37, %v786_v36 }
  0xf5   :  { %v806_v7 = vadd.f32 %v801_v60, %v531_v0 }
 0x100   :  { %v1010_v38 = vpop.f32.mrf.mxu0 }
 0x101   :  { %v1024_v39 = vpop.f32.mrf.mxu1 }
 0x102   :  { %v1025_v61 = vadd.f32 %v1024_v39, %v1010_v38 }
 0x104   :  { %v1057_v8 = vadd.f32 %v1025_v61, %v803_v1 }
 0x106   :  { %v1061_v13 = vmul.f32 %v1057_v8, %v1057_v8 }
 0x107   :  { %v1038_v43 = vpop.f32.mrf.mxu2 }
 0x108   :  { %v1052_v45 = vpop.f32.mrf.mxu3  ;;  %v1012_v49 = vpop.f32.mrf.mxu0 }
 0x109   :  { %v1026_v50 = vpop.f32.mrf.mxu1  ;;  %v1053_v54 = vadd.f32 %v1052_v45, %v1038_v43 }
 0x10a   :  { %v1027_v63 = vadd.f32 %v1026_v50, %v1012_v49 }
 0x10b   :  { %v1058_v3 = vadd.f32 %v1053_v54, %v804_v59 }
 0x10c   :  { %v1059_v9 = vadd.f32 %v1027_v63, %v805_v2 }
 0x10d   :  { %v1062_v11 = vmul.f32 %v1058_v3, %v1058_v3 }
 0x10e   :  { %v1063_v14 = vmul.f32 %v1059_v9, %v1059_v9 }
 0x10f   :  { %v1040_v4 = vpop.f32.mrf.mxu2  ;;  %v1065_v16 = vadd.f32 %v1062_v11, %v1061_v13 }
 0x110   :  { %v1054_v6 = vpop.f32.mrf.mxu3 }
 0x111   :  { %v1055_v10 = vadd.f32 %v1054_v6, %v1040_v4 }
 0x113   :  { %v1060_v12 = vadd.f32 %v1055_v10, %v806_v7 }
 0x115   :  { %v1064_v15 = vmul.f32 %v1060_v12, %v1060_v12 }
 0x117   :  { %v1066_v17 = vadd.f32 %v1064_v15, %v1063_v14 }
 0x119   :  { %v1067_v18 = vadd.f32 %v1066_v17, %v1065_v16 }
 0x11b   :  { %1068 = vst [vmem:[%s2647_s3] sm:$0xff] %v1067_v18 }

</bundles_post_ra>
